<compile_context>
chip_gen: v6e
topology: v6e:2x2x1
jax: 0.10.0
libtpu: 0.0.40
codegen_flags: <defaults>
</compile_context>

<pallas_src>
import jax
import jax.numpy as jnp
from jax.experimental import pallas as pl
from jax.experimental.pallas import tpu as pltpu


def _patch_embed_kernel(x_ref, w_ref, b_ref, o_ref, acc_ref):
    # x_ref: (tm, P)   one channel's rows for this (batch, row-tile)
    # w_ref: (P, E)    that channel's projection weights
    # b_ref: (1, E)    bias
    # o_ref: (tm, E)   output rows (revisited across the C axis)
    # acc_ref: (tm, E) f32 accumulator scratch
    c = pl.program_id(2)

    @pl.when(c == 0)
    def _init():
        acc_ref[...] = jnp.zeros_like(acc_ref)

    acc_ref[...] += jnp.dot(
        x_ref[...], w_ref[...], preferred_element_type=jnp.float32
    )

    @pl.when(c == pl.num_programs(2) - 1)
    def _finalize():
        o_ref[...] = (acc_ref[...] + b_ref[...]).astype(o_ref.dtype)


def patch_embed_forward(x, weight, bias, patch_size, *, tm=1024):
    """x: (B, C, H, W) f32; weight: (E, C, 1, P); bias: (E,). Returns (B, H*(W//P), E)."""
    B, C, H, W = x.shape
    E = weight.shape[0]
    P = patch_size
    assert W % P == 0, "W must be a multiple of patch_size (as in the PyTorch module)"
    Wp = W // P
    R = H * Wp                      # patches (rows) per batch element

    # ---- glue: pure reshapes on the activation (no data movement) ----
    x4 = x.reshape(B, C, R, P)                       # (B, C, R, P)  -- free
    w3 = weight.reshape(E, C, P).transpose(1, 2, 0)  # (C, P, E)     -- tiny
    b2 = bias.reshape(1, E)                          # (1, E)

    # ---- row tile selection ----
    # Big tiles amortize per-step overhead and fill the MXU.  The sublane dim
    # of a block must be a multiple of 8 or equal the full array dim, so if R
    # is small (or not 8-aligned) we just take the whole row axis in one block
    # (R ~ 1.9K rows at the real module shapes: a few hundred KiB per buffer).
    tm = max(8, (tm // 8) * 8)
    if R <= tm or R % 8 != 0:
        tm_eff = R
    else:
        tm_eff = tm
    nrt = pl.cdiv(R, tm_eff)        # padded last block is masked by the pipeline

    out = pl.pallas_call(
        _patch_embed_kernel,
        out_shape=jax.ShapeDtypeStruct((B, R, E), x.dtype),
        grid_spec=pltpu.PrefetchScalarGridSpec(
            num_scalar_prefetch=0,
            grid=(B, nrt, C),                                   # C = reduction, last
            in_specs=[
                # activation rows for (batch b, row-tile i, channel c)
                pl.BlockSpec((None, None, tm_eff, P),
                             lambda b, i, c: (b, c, i, 0)),
                # per-channel weight slab, resident across (b, i)
                pl.BlockSpec((None, P, E), lambda b, i, c: (c, 0, 0)),
                # bias, resident
                pl.BlockSpec((1, E), lambda b, i, c: (0, 0)),
            ],
            # output block constant across c -> accumulator; written once at c==C-1
            out_specs=pl.BlockSpec((None, tm_eff, E),
                                   lambda b, i, c: (b, i, 0)),
            scratch_shapes=[pltpu.VMEM((tm_eff, E), jnp.float32)],
        ),
        compiler_params=pltpu.CompilerParams(
            dimension_semantics=("parallel", "parallel", "arbitrary")),
    )(x4, w3, b2)

    # already (B, H*Wp, E), row index = h*Wp + wp  == flatten(2).transpose(1,2)
    return out


def _reference(x, weight, bias, patch_size):
    """Pure-JAX reference mirroring the PyTorch module."""
    B, C, H, W = x.shape
    E = weight.shape[0]
    P = patch_size
    Wp = W // P
    x_patches = x.reshape(B, C, H, Wp, P).transpose(0, 2, 3, 1, 4).reshape(-1, C * P)
    out = x_patches @ weight.reshape(E, C * P).T + bias[None, :]
    return out.reshape(B, H * Wp, E)


if __name__ == "__main__":
    # Small, module-consistent shapes:
    #   EEG_size=200, patch_size=50, in_chans=1, embed_dim=32, H(=EEG electrodes)=4
    B, C, H, W = 2, 1, 4, 200
    P, E = 50, 32

    key = jax.random.PRNGKey(0)
    kx, kw, kb = jax.random.split(key, 3)
    x = jax.random.normal(kx, (B, C, H, W), dtype=jnp.float32)
    # Conv2d weight shape: (embed_dim, in_chans, 1, patch_size), bias (embed_dim,)
    weight = jax.random.normal(kw, (E, C, 1, P), dtype=jnp.float32) * 0.02
    bias = jax.random.normal(kb, (E,), dtype=jnp.float32) * 0.02

    out = jax.block_until_ready(patch_embed_forward(x, weight, bias, P))
    ref = _reference(x, weight, bias, P)
    assert out.shape == (B, H * (W // P), E), out.shape
    assert jnp.allclose(out, ref, atol=1e-5, rtol=1e-5), "mismatch vs reference (C=1)"

    # Also exercise the multi-channel reduction path (in_chans > 1).
    C2 = 2
    x2 = jax.random.normal(kx, (B, C2, H, W), dtype=jnp.float32)
    w2 = jax.random.normal(kw, (E, C2, 1, P), dtype=jnp.float32) * 0.02
    out2 = jax.block_until_ready(patch_embed_forward(x2, w2, bias, P))
    ref2 = _reference(x2, w2, bias, P)
    assert jnp.allclose(out2, ref2, atol=1e-5, rtol=1e-5), "mismatch vs reference (C=2)"

    print("KERNEL_OK")
</pallas_src>

<mosaic_0001>
module attributes {stable_mosaic.version = 11 : i64} {
  func.func @_patch_embed_kernel(%arg0: i32, %arg1: i32, %arg2: i32, %arg3: memref<1x1x16x50xf32, #tpu.memory_space<vmem>>, %arg4: memref<1x50x32xf32, #tpu.memory_space<vmem>>, %arg5: memref<1x32xf32, #tpu.memory_space<vmem>>, %arg6: memref<1x16x32xf32, #tpu.memory_space<vmem>>, %arg7: memref<16x32xf32, #tpu.memory_space<vmem>>) attributes {dimension_semantics = [#tpu.dimension_semantics<parallel>, #tpu.dimension_semantics<parallel>, #tpu.dimension_semantics<arbitrary>], iteration_bounds = array<i64: 2, 1, 1>, scalar_prefetch = 0 : i64, scratch_operands = 1 : i64, tpu.core_type = #tpu.core_type<tc>, window_params = [{transform_indices = @transform_0, window_bounds = array<i64: 1, 1, 16, 50>}, {transform_indices = @transform_1, window_bounds = array<i64: 1, 50, 32>}, {pipeline_mode = #tpu.pipeline_mode<synchronous>, transform_indices = @transform_2, window_bounds = array<i64: 1, 32>}, {transform_indices = @transform_3, window_bounds = array<i64: 1, 16, 32>}]} {
    %c0_i32 = arith.constant 0 : i32
    %0 = arith.cmpi eq, %arg2, %c0_i32 : i32
    %1 = arith.extui %0 : i1 to i32
    %c0_i32_0 = arith.constant 0 : i32
    %2 = arith.cmpi ne, %1, %c0_i32_0 : i32
    scf.if %2 {
      %cst_13 = arith.constant 0.000000e+00 : f32
      %14 = vector.broadcast %cst_13 : f32 to vector<16x32xf32>
      %c0_14 = arith.constant 0 : index
      %c0_15 = arith.constant 0 : index
      %15 = vector.load %arg7[%c0_14, %c0_15] : memref<16x32xf32, #tpu.memory_space<vmem>>, vector<16x32xf32>
      tpu.vector_store %arg7[%c0_14, %c0_15], %14 {strides = array<i32>} : memref<16x32xf32, #tpu.memory_space<vmem>>, vector<16x32xf32>,
    } else {
    }
    %c0 = arith.constant 0 : index
    %c0_1 = arith.constant 0 : index
    %3 = vector.load %arg7[%c0, %c0_1] : memref<16x32xf32, #tpu.memory_space<vmem>>, vector<16x32xf32>
    %c0_2 = arith.constant 0 : index
    %c0_3 = arith.constant 0 : index
    %c0_4 = arith.constant 0 : index
    %c0_5 = arith.constant 0 : index
    %4 = vector.load %arg3[%c0_2, %c0_3, %c0_4, %c0_5] : memref<1x1x16x50xf32, #tpu.memory_space<vmem>>, vector<1x1x16x50xf32>
    %5 = vector.shape_cast %4 : vector<1x1x16x50xf32> to vector<16x50xf32>
    %c0_6 = arith.constant 0 : index
    %c0_7 = arith.constant 0 : index
    %c0_8 = arith.constant 0 : index
    %6 = vector.load %arg4[%c0_6, %c0_7, %c0_8] : memref<1x50x32xf32, #tpu.memory_space<vmem>>, vector<1x50x32xf32>
    %7 = vector.shape_cast %6 : vector<1x50x32xf32> to vector<50x32xf32>
    %cst = arith.constant dense<0.000000e+00> : vector<16x32xf32>
    %8 = tpu.matmul %5, %7, %cst {dimension_numbers = #tpu.dot_dimension_numbers<[1], [0], [0], [1], [0, 0, 1, 1], [], []>} : vector<16x50xf32>, vector<50x32xf32>, vector<16x32xf32> -> vector<16x32xf32>
    %9 = arith.addf %3, %8 : vector<16x32xf32>
    %c0_9 = arith.constant 0 : index
    %c0_10 = arith.constant 0 : index
    %10 = vector.load %arg7[%c0_9, %c0_10] : memref<16x32xf32, #tpu.memory_space<vmem>>, vector<16x32xf32>
    tpu.vector_store %arg7[%c0_9, %c0_10], %9 {strides = array<i32>} : memref<16x32xf32, #tpu.memory_space<vmem>>, vector<16x32xf32>,
    %c0_i32_11 = arith.constant 0 : i32
    %11 = arith.cmpi eq, %arg2, %c0_i32_11 : i32
    %12 = arith.extui %11 : i1 to i32
    %c0_i32_12 = arith.constant 0 : i32
    %13 = arith.cmpi ne, %12, %c0_i32_12 : i32
    scf.if %13 {
      %c0_13 = arith.constant 0 : index
      %c0_14 = arith.constant 0 : index
      %14 = vector.load %arg7[%c0_13, %c0_14] : memref<16x32xf32, #tpu.memory_space<vmem>>, vector<16x32xf32>
      %c0_15 = arith.constant 0 : index
      %c0_16 = arith.constant 0 : index
      %15 = vector.load %arg5[%c0_15, %c0_16] : memref<1x32xf32, #tpu.memory_space<vmem>>, vector<1x32xf32>
      %16 = vector.broadcast %15 : vector<1x32xf32> to vector<16x32xf32>
      %17 = arith.addf %14, %16 : vector<16x32xf32>
      %c0_17 = arith.constant 0 : index
      %c0_18 = arith.constant 0 : index
      %c0_19 = arith.constant 0 : index
      %18 = vector.load %arg6[%c0_17, %c0_18, %c0_19] : memref<1x16x32xf32, #tpu.memory_space<vmem>>, vector<1x16x32xf32>
      %19 = vector.shape_cast %18 : vector<1x16x32xf32> to vector<16x32xf32>
      %20 = vector.shape_cast %17 : vector<16x32xf32> to vector<1x16x32xf32>
      tpu.vector_store %arg6[%c0_17, %c0_18, %c0_19], %20 {strides = array<i32>} : memref<1x16x32xf32, #tpu.memory_space<vmem>>, vector<1x16x32xf32>,
    } else {
    }
    return
  }
  func.func @transform_0(%arg0: i32, %arg1: i32, %arg2: i32) -> (i32, i32, i32, i32) {
    %c0_i32 = arith.constant 0 : i32
    %c0_i32_0 = arith.constant 0 : i32
    return %arg0, %arg2, %arg1, %c0_i32 : i32, i32, i32, i32
  }
  func.func @transform_1(%arg0: i32, %arg1: i32, %arg2: i32) -> (i32, i32, i32) {
    %c0_i32 = arith.constant 0 : i32
    %c0_i32_0 = arith.constant 0 : i32
    %c0_i32_1 = arith.constant 0 : i32
    return %arg2, %c0_i32, %c0_i32_0 : i32, i32, i32
  }
  func.func @transform_2(%arg0: i32, %arg1: i32, %arg2: i32) -> (i32, i32) {
    %c0_i32 = arith.constant 0 : i32
    %c0_i32_0 = arith.constant 0 : i32
    %c0_i32_1 = arith.constant 0 : i32
    return %c0_i32, %c0_i32_0 : i32, i32
  }
  func.func @transform_3(%arg0: i32, %arg1: i32, %arg2: i32) -> (i32, i32, i32) {
    %c0_i32 = arith.constant 0 : i32
    %c0_i32_0 = arith.constant 0 : i32
    return %arg0, %arg1, %c0_i32 : i32, i32, i32
  }
}

</mosaic_0001>

<bundles_post_ra>
// kernel: tpu_custom_call.1
= control target key start
LH: loop header
LB: loop body
LE: loop exit
PB: predicated region body
PF: predicated region fallthrough
CT: control target
= control target key end

     0   :  { %8 = vsyncpa [#allocation4], 0  ;;  %s837_s0 = inlined_call_operand.vmem [shape: f32[2,1,16,50], index: 0, kind: input, shape index: {}]   ;;  %s838_s1 = inlined_call_operand.vmem [shape: f32[1,50,32], index: 1, kind: input, shape index: {}]   ;;  %s839_s2 = inlined_call_operand.vmem [shape: f32[1,32], index: 2, kind: input, shape index: {}]   ;;  %s840_s3 = inlined_call_operand.hbm [shape: f32[2,16,32], index: 3, kind: output, shape index: {}]  }
   0x1   :  { %10 = vsyncpa [#allocation4 + $0x1], 0  ;;  %s691_s12 = smov 0   ;;  %s693_s13 = smov 0  }
   0x2   :  { %s695_s14 = smov 0   ;;  %s697_s15 = smov 0  }
   0x3   :  { %s699_s16 = smov 0   ;;  %s701_s17 = smov 0  }
   0x4 LB: > { %s485_s18 = sadd.s32 4294967295, %s665_s17   ;;  %s486_s19 = sadd.s32 4294967294, %s665_s17   ;;  %s665_s17 = sphi %s701_s17, %s16_s17   ;;  %s661_s16 = sphi %s699_s16, %s847_s16   ;;  %s657_s15 = sphi %s697_s15, %s846_s15   ;;  %s653_s14 = sphi %s695_s14, %s845_s14   ;;  %s649_s13 = sphi %s693_s13, %s844_s13   ;;  %s645_s12 = sphi %s691_s12, %s843_s12  }
   0x5   : > { %s35_s20 = sadd.s32 1, %s661_s16  ;;  %s121_s21 = sadd.s32 1, %s653_s14 }
   0x6   : > { %p37_p0 = scmp.ge.s32.totalorder %s35_s20, 2  ;;  %p131_p1 = scmp.ne.s32.totalorder %s653_s14, %s649_s13 }
   0x7   : > { %p132_p2 = scmp.eq.s32.totalorder %s485_s18, 1  ;;  %p137_p3 = scmp.ne.s32.totalorder %s649_s13, %s645_s12 }
   0x8   : > { %s849_s20 = smov (%p37_p0, %s35_s20), 0  ;;  %p138_p5 = scmp.eq.s32.totalorder %s486_s19, 1 }
   0x9   : > { %p731_p4 = por %p132_p2, %p131_p1  ;;  %s116_s23 = ssub.s32 %s661_s16, %s849_s20 }
   0xa   : > { %p490_p6 = scmp.ge.s32.totalorder %s665_s17, 1  ;;  %p119_p7 = scmp.eq.s32.totalorder %s116_s23, 0 }
   0xb   : > { %p738_p8 = por %p138_p5, %p137_p3  ;;  %p184_p9 = scmp.lt.s32.totalorder %s665_s17, 3 }
   0xc   : > { %s744_s25 = scalar_select %p119_p7, %s653_s14, %s121_s21  }
   0xd   : > { %p185_p10 = pnand %p490_p6, %p184_p9 }
   0xe   : > { %p222_p11 = scmp.lt.s32.totalorder (!%p185_p10), %s657_s15, 1  ;;  %s218_s28 = sand.u32 (!%p185_p10), 1, %s649_s13  }
   0xf   : > { %188 = sbr.rel (%p185_p10) target bundleno = 256 (0x100), region = 32  ;;  %s491_s29 = sshll.u32 (!%p185_p10), %s218_s28, 4 }
  0x10   : > { %s220_s6 = scalar_lea.vmem (!%p185_p10), [#allocation3], %s491_s29  ;;  %s668_s18 = smov (!%p185_p10), [#allocation3]  }
  0x11   : > { %s382_s7 = sshll.u32 (!%p185_p10), %s220_s6, 4  ;;  %s593_s19 = sshll.u32 (!%p185_p10), %s668_s18, 4  ;;  %s788_s7 = int_to_ptr.vmem [resolvable:$true] %s382_s7  ;;  %s594_s19 = int_to_ptr.vmem [resolvable:$false] %s593_s19 }
  0x12   : > { %s595_s21 = scalar_lea.vmem (!%p185_p10), %s594_s19, 512  ;;  %p596_p1 = scmp.lt.s32.totalorder (!%p185_p10), %s788_s7, %s594_s19 }
  0x14   : > { %v258_v0 = vld [vmem:[%s838_s1 + $0x30] sm:$0x3]  ;;  %vm266_vm0 = vcmask 1041408   ;;  %v257_v1 = vld [vmem:[%s838_s1 + $0x28] sm:$0xff]  ;;  %vm245_vm1 = vcmask 261120   ;;  %v256_v2 = vld [vmem:[%s838_s1 + $0x20] sm:$0xff] }
  0x15   : > { %514 = vmatprep.subr.msk.mxu0 %vm266_vm0, %v258_v0  ;;  %s223_s5 = scalar_select %p222_p11, %s657_s15, 1  ;;  %v667_v3 = vmov 0.0   ;;  %v255_v4 = vld [vmem:[%s838_s1 + $0x18] sm:$0xff]  ;;  %vm259_vm2 = vcmask 408576   ;;  %v254_v5 = vld [vmem:[%s838_s1 + $0x10] sm:$0xff]  ;;  %v253_v7 = vld [vmem:[%s838_s1 + $0x8] sm:$0xff] }
  0x16   : > { %515 = vmatpush3.msk.msra.mxu0 %vm266_vm0, %v258_v0  ;;  %247 = vst.msk [vmem:[#allocation2 + $0x8] sm:$0xff] %vm245_vm1, %v667_v3  ;;  %246 = vst.msk [vmem:[#allocation2] sm:$0xff] %vm245_vm1, %v667_v3  ;;  %v252_v8 = vld [vmem:[%s838_s1] sm:$0xff] }
  0x17   : > { %516 = vmatprep.subr.mxu0 %v257_v1  ;;  %s503_s8 = sshll.u32 %s223_s5, 4  ;;  %v497_v16 = vld [vmem:[%s839_s2] ss:$0 sm:$0xff]  ;;  %s504_s5 = sshll.u32 %s657_s15, 8 }
  0x18   : > { %517 = vmatpush3.msra.mxu0 %v257_v1  ;;  %s233_s11 = scalar_lea.vmem %s837_s0, %s503_s8  ;;  %s786_s10 = scalar_lea.hbm %s840_s3, %s504_s5 }
  0x19   : > { %518 = vmatprep.subr.mxu0 %v256_v2  ;;  %v250_v6 = vld [vmem:[%s233_s11] sm:$0xff]  ;;  %v251_v9 = vld [vmem:[%s233_s11 + $0x8] sm:$0xff]  ;;  %s792_s15 = scalar_lea.sflag [#allocation4], %s218_s28  ;;  %s589_s11 = scalar_lea.vmem %s788_s7, 256 }
  0x1a   : > { %519 = vmatpush3.msra.mxu0 %v256_v2  ;;  %528 = vmatprep.mubr.msk.f32.mxu0 %vm259_vm2, %v250_v6  ;;  %p590_p12 = scmp.ne.s32.totalorder %s788_s7, %s589_s11  ;;  %p597_p2 = scmp.lt.s32.totalorder %s595_s21, %s589_s11 }
  0x1b   : > { %520 = vmatprep.subr.mxu0 %v255_v4 }
  0x1c   : > { %521 = vmatpush3.msra.mxu0 %v255_v4  ;;  %p591_p13 = pnand %p590_p12, %p731_p4  ;;  %p598_p3 = por %p597_p2, %p596_p1 }
  0x1d   : > { %522 = vmatprep.subr.mxu0 %v254_v5  ;;  %v249_v10 = vld [vmem:[#allocation2 + $0x8] sm:$0xff]  ;;  %v248_v12 = vld [vmem:[#allocation2] sm:$0xff] }
  0x1e   : > { %523 = vmatpush3.msra.mxu0 %v254_v5  ;;  %p592_p0 = pneg %p591_p13 }
  0x1f   : > { %524 = vmatprep.subr.mxu0 %v253_v7 }
  0x20   : > { %525 = vmatpush3.msra.mxu0 %v253_v7  ;;  %p599_p5 = pnand %p598_p3, %p592_p0 }
  0x21   : > { %526 = vmatprep.subr.mxu0 %v252_v8 }
  0x22   : > { %527 = vmatpush3.msra.mxu0 %v252_v8 }
  0x23   : > { %529 = vmatmul.mubr.msk.f32.vlgmr.msra.gmra.mxu0 %vm259_vm2, %v251_v9 }
  0xe3   : > { %v530_v11 = vpop.f32.mrf.mxu0 }
  0xe4   : > { %v346_v13 = vadd.f32 %v530_v11, %v249_v10 }
  0xe5   : > { %v336_v14 = vpop.f32.mrf.mxu0 }
  0xe6   : > { %349 = vst.msk [vmem:[#allocation2 + $0x8] sm:$0xff] %vm245_vm1, %v346_v13  ;;  %v345_v15 = vadd.f32 %v336_v14, %v248_v12 }
  0xe8   : > { %348 = vst.msk [vmem:[#allocation2] sm:$0xff] %vm245_vm1, %v345_v15 }
  0xed   : > { %v354_v17 = vld [vmem:[#allocation2 + $0x8] sm:$0xff] }
  0xee   : > { %v363_v18 = vadd.f32 %v497_v16, %v354_v17 }
  0xef   : > { %v353_v19 = vld [vmem:[#allocation2] sm:$0xff] }
  0xf0   : > { %v362_v20 = vadd.f32 %v497_v16, %v353_v19  ;;  %365 = vst.msk [vmem:[%s220_s6 + $0x8] sm:$0xff] %vm245_vm1, %v363_v18 }
  0xf2   : > { %364 = vst.msk [vmem:[%s220_s6] sm:$0xff] %vm245_vm1, %v362_v20 }
  0xf3   : > { %602 = shalt.err (!%p599_p5)
}
  0xf4   : > { %s603_s23 = scalar_lea.hbm %s786_s10, 256  ;;  %s607_s28 = scalar_lea.hbm %s840_s3, 512 }
  0xf5   : > { %p604_p6 = scmp.ne.s32.totalorder %s786_s10, %s603_s23  ;;  %p608_p10 = scmp.lt.s32.totalorder %s786_s10, %s840_s3 }
  0xf6   : > { %p609_p11 = scmp.lt.s32.totalorder %s607_s28, %s603_s23 }
  0xf7   : > { %p605_p7 = pnand %p604_p6, %p731_p4 }
  0xf8   : > { %p610_p12 = por %p609_p11, %p608_p10 }
  0xf9   : > { %p606_p9 = pneg %p605_p7 }
  0xfb   : > { %p611_p13 = pnand %p610_p12, %p606_p9 }
  0xfd   : > { %614 = shalt.err (!%p611_p13)
}
  0xfe   : > { %s669_s4 = smov 128   ;;  %s670_s5 = smov 8  }
  0xff   : > { %531 = dma.vmem_to_hbm [thread:$0]  (%p731_p4), %s788_s7, 256, %s786_s10, %s792_s15, %s669_s4, %s669_s4, %s670_s5  }
 0x100 PF: > { %p537_p0 = scmp.ge.s32.totalorder %s665_s17, 2  ;;  %s397_s6 = sand.u32 1, %s645_s12  }
 0x101   : > { %s398_s8 = scalar_lea.sflag [#allocation4], %s397_s6 }
 0x102   : > { %p534_p1 = pnand %p537_p0, %p738_p8 }
 0x104   : > { %p535_p2 = pneg %p534_p1 }
 0x106   : > { %640 = dma.done.wait (%p535_p2), %s398_s8, 256  }
 0x107   : > { %642 = vsyncadd (%p535_p2), %s398_s8, 4294967040  ;;  %s16_s17 = sadd.s32 1, %s665_s17   ;;  %s843_s12 = smov %s649_s13 }
 0x108   : > { %p13_p3 = scmp.ge.s32.totalorder %s16_s17, 4   ;;  %s844_s13 = smov %s653_s14 }
 0x109   : > { %s845_s14 = smov %s744_s25  ;;  %s846_s15 = smov %s661_s16 }
 0x10a   : > { %s847_s16 = smov %s849_s20  ;;  %15 = sbr.rel (!%p13_p3) target bundleno = 4 (0x4), region = 78 }
 0x10f   :  { %403 = vsyncpa [#allocation4], 1 }
 0x110   :  { %405 = vsyncpa [#allocation4 + $0x1], 1 }

</bundles_post_ra>
